<compile_context>
chip_gen: v6e
topology: v6e:2x2x1
jax: 0.10.0
libtpu: 0.0.40
codegen_flags: <defaults>
</compile_context>

<pallas_src>
import jax
import jax.numpy as jnp
from jax.experimental import pallas as pl
from jax.experimental.pallas import tpu as pltpu


def _round_up(n, m):
    return (n + m - 1) // m * m


# ---------------------------------------------------------------------------
# Kernel: fused [Linear -> ReLU]*k -> Linear on one batch tile.
# ---------------------------------------------------------------------------
def _film_mlp_kernel(x_ref, w_ref, o_ref):
    """
    x_ref: (tile_b, in_dim)  f32   raw (un-padded) input block
    w_ref: (n_layers, P, P)  bf16  packed weights; bias folded into row P-1,
                                   "ones lane" carried at (P-1, P-1) for every
                                   non-final layer
    o_ref: (tile_b, out_dim) f32   narrow (lane = out_dim) output block
    """
    n_layers, P, _ = w_ref.shape
    in_dim = x_ref.shape[-1]
    out_dim = o_ref.shape[-1]

    # Layer 0: matmul against the live rows of the first slab layer. Adding
    # the bias row (row P-1) both applies the bias and injects the carried
    # "ones" lane (1.0 at column P-1) used to fold the later layers' biases.
    w0 = w_ref[0]
    h = jnp.dot(
        x_ref[...].astype(jnp.bfloat16),
        w0[:in_dim, :],
        preferred_element_type=jnp.float32,
    )
    h = h + w0[P - 1 : P, :].astype(jnp.float32)
    if n_layers > 1:
        h = jnp.maximum(h, 0.0)  # ReLU (hidden layers only), in f32

    # Remaining layers: bias comes in through the ones lane. Static, short,
    # unrolled loop (2 more layers for the default config).
    for i in range(1, n_layers):
        h = jnp.dot(h.astype(jnp.bfloat16), w_ref[i],
                    preferred_element_type=jnp.float32)
        if i < n_layers - 1:
            h = jnp.maximum(h, 0.0)

    o_ref[...] = h[:, :out_dim].astype(o_ref.dtype)


# ---------------------------------------------------------------------------
# Parameter packing: fold biases + pad into a single bf16 lane-dense slab
# ---------------------------------------------------------------------------
def pack_film_params(params, lane=128, dtype=jnp.bfloat16):
    """Pack [(W(in,out), b(out,)), ...] into one (n_layers, P, P) slab.

    Row P-1 of layer i holds b_i; (P-1, P-1) of every non-final layer holds
    1.0 so the "ones lane" survives the hidden matmuls. Everything else that
    falls outside the real (in, out) block is zero.
    """
    dims = [w.shape[0] for w, _ in params] + [w.shape[1] for w, _ in params]
    P = _round_up(max(dims) + 1, lane)  # +1 reserves the bias / ones lane
    n = len(params)
    slab = jnp.zeros((n, P, P), jnp.float32)
    for i, (w, b) in enumerate(params):
        fi, fo = w.shape
        slab = slab.at[i, :fi, :fo].set(w.astype(jnp.float32))
        slab = slab.at[i, P - 1, :fo].set(b.reshape(-1).astype(jnp.float32))
        if i < n - 1:
            slab = slab.at[i, P - 1, P - 1].set(1.0)  # carry the ones lane
    return slab.astype(dtype)


# ---------------------------------------------------------------------------
# Forward wrapper
# ---------------------------------------------------------------------------
def film_generator_forward(x, packed_w, output_dim, *,
                           block_b=1024, gridless_max_batch=512):
    """Run the fused FiLM-generator MLP. x: (B, input_dim) -> (B, output_dim)."""
    assert x.ndim == 2
    assert x.dtype == jnp.float32, "kernel assumes f32 activations (sublane=8)"
    B, in_dim = x.shape
    n_layers, P, _ = packed_w.shape
    assert in_dim < P and output_dim <= P - 1

    if B <= gridless_max_batch:
        # Small batch: single invocation, everything VMEM-resident, no grid /
        # pipeline machinery, and no wrapper-side pad or slice at all.
        return pl.pallas_call(
            _film_mlp_kernel,
            out_shape=jax.ShapeDtypeStruct((B, output_dim), x.dtype),
            in_specs=[
                pl.BlockSpec(memory_space=pltpu.MemorySpace.VMEM),
                pl.BlockSpec(memory_space=pltpu.MemorySpace.VMEM),
            ],
            out_specs=pl.BlockSpec(memory_space=pltpu.MemorySpace.VMEM),
        )(x, packed_w)

    # Large batch: tile the batch axis, keep the weight slab resident across
    # steps. Shrink the tile (>=128 rows) until the grid has >= 2 parallel
    # steps so both v7x TensorCores get work.
    bb = block_b
    while bb > 128 and pl.cdiv(B, bb) < 2:
        bb //= 2
    Bp = _round_up(B, bb)
    xp = x if Bp == B else jnp.pad(x, ((0, Bp - B), (0, 0)))

    out = pl.pallas_call(
        _film_mlp_kernel,
        out_shape=jax.ShapeDtypeStruct((Bp, output_dim), x.dtype),
        grid=(Bp // bb,),
        in_specs=[
            pl.BlockSpec((bb, in_dim), lambda i: (i, 0)),          # raw-width input
            pl.BlockSpec((n_layers, P, P), lambda i: (0, 0, 0)),   # weights resident
        ],
        out_specs=pl.BlockSpec((bb, output_dim), lambda i: (i, 0)),  # narrow output
        compiler_params=pltpu.CompilerParams(
            dimension_semantics=("parallel",)),
    )(xp, packed_w)
    return out if Bp == B else out[:B]


# ---------------------------------------------------------------------------
# Init + pure-JAX reference
# ---------------------------------------------------------------------------
def init_params(key, input_dim, output_dim, layer_dims):
    """Deterministic init mimicking nn.Linear (weights stored as (in, out))."""
    dims = [input_dim] + list(layer_dims) + [output_dim]
    params = []
    for i in range(len(dims) - 1):
        key, kw, kb = jax.random.split(key, 3)
        fan_in, fan_out = dims[i], dims[i + 1]
        bound = 1.0 / (fan_in ** 0.5)  # PyTorch nn.Linear default uniform bound
        w = jax.random.uniform(kw, (fan_in, fan_out), jnp.float32, -bound, bound)
        b = jax.random.uniform(kb, (fan_out,), jnp.float32, -bound, bound)
        params.append((w, b))
    return params


def reference_forward(x, params):
    """Pure-JAX f32 reference of the same MLP for correctness checking."""
    h = x
    for i, (w, b) in enumerate(params):
        h = h @ w + b
        if i < len(params) - 1:
            h = jnp.maximum(h, 0.0)
    return h


# ---------------------------------------------------------------------------
# Self-test
# ---------------------------------------------------------------------------
if __name__ == "__main__":
    # Shapes consistent with SimpleFiLMGenerator(input_dim=32, output_dim=32,
    # layer_dims=[64, 64]) at batch=2.
    batch, input_dim, output_dim = 2, 32, 32
    layer_dims = [64, 64]

    key = jax.random.PRNGKey(0)
    key, kx = jax.random.split(key)
    x = jax.random.normal(kx, (batch, input_dim), dtype=jnp.float32)
    params = init_params(key, input_dim, output_dim, layer_dims)
    packed_w = pack_film_params(params)

    # bf16 weights/operands with f32 accumulation -> bf16-level tolerance
    # against the f32 reference.
    tol = dict(atol=2e-2, rtol=2e-2)

    # Small-batch (gridless, fully VMEM-resident) path.
    out = jax.block_until_ready(film_generator_forward(x, packed_w, output_dim))
    ref = reference_forward(x, params)
    assert out.shape == (batch, output_dim)
    assert jnp.allclose(out, ref, **tol), "small-batch mismatch"

    # Large-batch (batch-tiled, weight-resident, grid >= 2) path.
    key, kx2 = jax.random.split(key)
    x_big = jax.random.normal(kx2, (2048, input_dim), dtype=jnp.float32)
    out_big = jax.block_until_ready(
        film_generator_forward(x_big, packed_w, output_dim))
    assert out_big.shape == (2048, output_dim)
    assert jnp.allclose(out_big, reference_forward(x_big, params), **tol), \
        "tiled mismatch"

    # Non-divisible batch: exercises tile shrinking + row padding.
    key, kx3 = jax.random.split(key)
    x_odd = jax.random.normal(kx3, (777, input_dim), dtype=jnp.float32)
    out_odd = jax.block_until_ready(
        film_generator_forward(x_odd, packed_w, output_dim))
    assert out_odd.shape == (777, output_dim)
    assert jnp.allclose(out_odd, reference_forward(x_odd, params), **tol), \
        "padded-tile mismatch"

    print("KERNEL_OK")
</pallas_src>

<mosaic_0001>
module attributes {stable_mosaic.version = 11 : i64} {
  func.func @_film_mlp_kernel(%arg0: memref<2x32xf32, #tpu.memory_space<vmem>>, %arg1: memref<3x128x128xbf16, #tpu.memory_space<vmem>>, %arg2: memref<2x32xf32, #tpu.memory_space<vmem>>) attributes {dimension_semantics = [], scalar_prefetch = 0 : i64, scratch_operands = 0 : i64, tpu.core_type = #tpu.core_type<tc>} {
    %c0 = arith.constant 0 : index
    %c0_0 = arith.constant 0 : index
    %c0_1 = arith.constant 0 : index
    %0 = vector.load %arg1[%c0, %c0_0, %c0_1] : memref<3x128x128xbf16, #tpu.memory_space<vmem>>, vector<1x128x128xbf16>
    %1 = vector.shape_cast %0 : vector<1x128x128xbf16> to vector<128x128xbf16>
    %c0_2 = arith.constant 0 : index
    %c0_3 = arith.constant 0 : index
    %2 = vector.load %arg0[%c0_2, %c0_3] : memref<2x32xf32, #tpu.memory_space<vmem>>, vector<2x32xf32>
    %3 = arith.truncf %2 : vector<2x32xf32> to vector<2x32xbf16>
    %4 = vector.extract_strided_slice %1 {offsets = [0, 0], sizes = [32, 128], strides = [1, 1]} : vector<128x128xbf16> to vector<32x128xbf16>
    %cst = arith.constant dense<0.000000e+00> : vector<2x128xf32>
    %5 = tpu.matmul %3, %4, %cst {dimension_numbers = #tpu.dot_dimension_numbers<[1], [0], [0], [1], [0, 0, 1, 1], [], []>} : vector<2x32xbf16>, vector<32x128xbf16>, vector<2x128xf32> -> vector<2x128xf32>
    %6 = vector.extract_strided_slice %1 {offsets = [127, 0], sizes = [1, 128], strides = [1, 1]} : vector<128x128xbf16> to vector<1x128xbf16>
    %7 = arith.extf %6 : vector<1x128xbf16> to vector<1x128xf32>
    %8 = vector.broadcast %7 : vector<1x128xf32> to vector<2x128xf32>
    %9 = arith.addf %5, %8 : vector<2x128xf32>
    %cst_4 = arith.constant 0.000000e+00 : f32
    %10 = vector.broadcast %cst_4 : f32 to vector<2x128xf32>
    %11 = arith.maximumf %9, %10 : vector<2x128xf32>
    %12 = arith.truncf %11 : vector<2x128xf32> to vector<2x128xbf16>
    %c1 = arith.constant 1 : index
    %c0_5 = arith.constant 0 : index
    %c0_6 = arith.constant 0 : index
    %13 = vector.load %arg1[%c1, %c0_5, %c0_6] : memref<3x128x128xbf16, #tpu.memory_space<vmem>>, vector<1x128x128xbf16>
    %14 = vector.shape_cast %13 : vector<1x128x128xbf16> to vector<128x128xbf16>
    %cst_7 = arith.constant dense<0.000000e+00> : vector<2x128xf32>
    %15 = tpu.matmul %12, %14, %cst_7 {dimension_numbers = #tpu.dot_dimension_numbers<[1], [0], [0], [1], [0, 0, 1, 1], [], []>} : vector<2x128xbf16>, vector<128x128xbf16>, vector<2x128xf32> -> vector<2x128xf32>
    %cst_8 = arith.constant 0.000000e+00 : f32
    %16 = vector.broadcast %cst_8 : f32 to vector<2x128xf32>
    %17 = arith.maximumf %15, %16 : vector<2x128xf32>
    %18 = arith.truncf %17 : vector<2x128xf32> to vector<2x128xbf16>
    %c2 = arith.constant 2 : index
    %c0_9 = arith.constant 0 : index
    %c0_10 = arith.constant 0 : index
    %19 = vector.load %arg1[%c2, %c0_9, %c0_10] : memref<3x128x128xbf16, #tpu.memory_space<vmem>>, vector<1x128x128xbf16>
    %20 = vector.shape_cast %19 : vector<1x128x128xbf16> to vector<128x128xbf16>
    %cst_11 = arith.constant dense<0.000000e+00> : vector<2x128xf32>
    %21 = tpu.matmul %18, %20, %cst_11 {dimension_numbers = #tpu.dot_dimension_numbers<[1], [0], [0], [1], [0, 0, 1, 1], [], []>} : vector<2x128xbf16>, vector<128x128xbf16>, vector<2x128xf32> -> vector<2x128xf32>
    %22 = vector.extract_strided_slice %21 {offsets = [0, 0], sizes = [2, 32], strides = [1, 1]} : vector<2x128xf32> to vector<2x32xf32>
    %c0_12 = arith.constant 0 : index
    %c0_13 = arith.constant 0 : index
    %23 = vector.load %arg2[%c0_12, %c0_13] : memref<2x32xf32, #tpu.memory_space<vmem>>, vector<2x32xf32>
    tpu.vector_store %arg2[%c0_12, %c0_13], %22 {strides = array<i32>} : memref<2x32xf32, #tpu.memory_space<vmem>>, vector<2x32xf32>,
    return
  }
}

</mosaic_0001>

<bundles_post_ra>
// kernel: tpu_custom_call.1
= control target key start
LH: loop header
LB: loop body
LE: loop exit
PB: predicated region body
PF: predicated region fallthrough
CT: control target
= control target key end

     0   :  { %7 = vsyncpa [#allocation3], 0  ;;  %s552_s0 = inlined_call_operand.hbm [shape: f32[2,32], index: 0, kind: input, shape index: {}]   ;;  %s553_s1 = inlined_call_operand.hbm [shape: bf16[3,128,128], index: 1, kind: input, shape index: {}]   ;;  %s554_s2 = inlined_call_operand.hbm [shape: f32[2,32], index: 2, kind: output, shape index: {}]  }
   0x1   :  { %8 = vsyncpa [#allocation6], 0 }
   0x2   :  { %9 = vsyncpa [#allocation4], 0  ;;  %s518_s9 = smov [#allocation2]   ;;  %s519_s11 = smov [#allocation5]  }
   0x3   :  { %s16_s10 = sshll.u32 %s518_s9, 4  ;;  %s25_s12 = sshll.u32 %s519_s11, 4  ;;  %s17_s10 = int_to_ptr.vmem [resolvable:$true] %s16_s10  ;;  %s26_s12 = int_to_ptr.vmem [resolvable:$true] %s25_s12 }
   0x4   :  { %s460_s13 = scalar_lea.vmem %s17_s10, 32  ;;  %p465_p1 = scmp.lt.s32.totalorder %s17_s10, %s17_s10 }
   0x5   :  { %p461_p0 = scmp.ne.s32.totalorder %s17_s10, %s460_s13  ;;  %p466_p2 = scmp.lt.s32.totalorder %s460_s13, %s460_s13 }
   0x7   :  { %p467_p3 = por %p466_p2, %p465_p1 }
   0x9   :  { %p468_p4 = pnand %p467_p3, %p461_p0 }
   0xb   :  { %471 = shalt.err (!%p468_p4)
}
   0xc   :  { %19 = dma.hbm_to_vmem [thread:$0]  %s552_s0, 32, %s17_s10, [#allocation3]  }
   0xd   :  { %s480_s16 = scalar_lea.vmem %s26_s12, 3072  ;;  %p485_p6 = scmp.lt.s32.totalorder %s26_s12, %s26_s12 }
   0xe   :  { %p481_p5 = scmp.ne.s32.totalorder %s26_s12, %s480_s16  ;;  %p486_p7 = scmp.lt.s32.totalorder %s480_s16, %s480_s16 }
  0x10   :  { %p487_p8 = por %p486_p7, %p485_p6 }
  0x12   :  { %p488_p9 = pnand %p487_p8, %p481_p5 }
  0x14   :  { %491 = shalt.err (!%p488_p9)
}
  0x15   :  { %s520_s17 = smov 64   ;;  %s521_s18 = smov 4  }
  0x16   :  { %31 = dma.hbm_to_vmem [thread:$0]  %s553_s1, 3072, %s26_s12, [#allocation6], %s520_s17, %s520_s17, %s521_s18  }
  0x17   :  { %512 = dma.done.wait [#allocation3], 32  }
  0x18   :  { %513 = vsyncadd [#allocation3], 4294967264 }
  0x19   :  { %514 = dma.done.wait [#allocation6], 3072  }
  0x1a   :  { %515 = vsyncadd [#allocation6], 4294964224  ;;  %v522_v0 = vmov 0.0   ;;  %vm523_vm0 = vmmov 0   ;;  %v434_v1 = vld [vmem:[#allocation5 + $0x8] sm:$0xff]   ;;  %v435_v2 = vld [vmem:[#allocation5] sm:$0xff]   ;;  %v47_v20 = vlaneseq }
  0x1b   :  { %379 = vmatprep.subr.bf16.mxu0 %v522_v0  ;;  %383 = vmatprep.mubr.msk.bf16.mxu0 %vm523_vm0, %v522_v0  ;;  %v44_v3 = vld [vmem:[#allocation2] sm:$0x3]  ;;  %v437_v6 = vld [vmem:[#allocation5 + $0x70] sm:$0xff]   ;;  %vm63_vm1 = vcmask 261120   ;;  %v438_v7 = vld [vmem:[#allocation5 + $0x68] sm:$0xff]   ;;  %s524_s0 = smov [#allocation7]  }
  0x1c   :  { %387 = vmatprep.subr.bf16.mxu1 %v522_v0  ;;  %403 = vmatprep.mubr.msk.bf16.mxu1 %vm523_vm0, %v522_v0  ;;  %v436_v4 = vld [vmem:[#allocation5 + $0x78] sm:$0xff]   ;;  %v45_v5 = vpack.c.bf16 %v44_v3, %v44_v3  ;;  %v439_v8 = vld [vmem:[#allocation5 + $0x60] sm:$0xff]   ;;  %v441_v10 = vld [vmem:[#allocation5 + $0x50] sm:$0xff]   ;;  %v48_v21 = vshrl.u32 %v47_v20, 7  ;;  %s329_s1 = sshll.u32 %s524_s0, 4  ;;  %vm321_vm2 = vcmask 254976   ;;  %s330_s1 = int_to_ptr.vmem [resolvable:$true] %s329_s1 }
  0x1d   :  { %380 = vmatpush3.bf16.msra.mxu0 %v434_v1  ;;  %388 = vmatpush3.bf16.msra.mxu1 %v436_v4  ;;  %v440_v9 = vld [vmem:[#allocation5 + $0x58] sm:$0xff]   ;;  %v442_v11 = vld [vmem:[#allocation5 + $0x48] sm:$0xff]   ;;  %v443_v12 = vld [vmem:[#allocation5 + $0x40] sm:$0xff]   ;;  %s492_s21 = scalar_lea.vmem %s330_s1, 32  ;;  %p497_p11 = scmp.lt.s32.totalorder %s330_s1, %s330_s1 }
  0x1e   :  { %381 = vmatprep.subr.bf16.mxu0 %v522_v0  ;;  %389 = vmatprep.subr.bf16.mxu1 %v522_v0  ;;  %v444_v13 = vld [vmem:[#allocation5 + $0xb8] sm:$0xff]   ;;  %v445_v14 = vld [vmem:[#allocation5 + $0xb0] sm:$0xff]   ;;  %v446_v15 = vld [vmem:[#allocation5 + $0xa8] sm:$0xff]   ;;  %v49_v24 = vsub.s32 7, %v48_v21  ;;  %p493_p10 = scmp.ne.s32.totalorder %s330_s1, %s492_s21  ;;  %p498_p12 = scmp.lt.s32.totalorder %s492_s21, %s492_s21 }
  0x1f   :  { %v447_v16 = vld [vmem:[#allocation5 + $0xa0] sm:$0xff]   ;;  %v448_v17 = vld [vmem:[#allocation5 + $0x98] sm:$0xff]   ;;  %v449_v18 = vld [vmem:[#allocation5 + $0x90] sm:$0xff]  }
  0x20   :  { %v450_v19 = vld [vmem:[#allocation5 + $0x88] sm:$0xff]   ;;  %v43_v22 = vld [vmem:[#allocation5 + $0x3c] sm:$0xf]  ;;  %v451_v33 = vld [vmem:[#allocation5 + $0x80] sm:$0xff]   ;;  %p499_p13 = por %p498_p12, %p497_p11 }
  0x21   :  { %382 = vmatpush3.bf16.msra.mxu0 %v435_v2  ;;  %390 = vmatpush3.bf16.msra.mxu1 %v437_v6  ;;  %v46_v23 = vunpack.c.l.bf16 %v43_v22 }
  0x22   :  { %407 = vmatprep.subr.bf16.mxu0 %v522_v0  ;;  %391 = vmatprep.subr.bf16.mxu1 %v522_v0  ;;  %p500_p0 = pnand %p499_p13, %p493_p10 }
  0x23   :  { %v50_v25 = vrot.slane %v46_v23, %v49_v24 }
  0x24   :  { %384 = vmatmul.mubr.msk.bf16.vlgmr.msra.gmra.mxu0 %vm63_vm1, %v45_v5 }
  0x25   :  { %423 = vmatprep.mubr.msk.bf16.mxu0 %vm523_vm0, %v522_v0  ;;  %392 = vmatpush3.bf16.msra.mxu1 %v438_v7 }
  0x26   :  { %393 = vmatprep.subr.bf16.mxu1 %v522_v0  ;;  %408 = vmatpush3.bf16.msra.mxu0 %v444_v13 }
  0x27   :  { %409 = vmatprep.subr.bf16.mxu0 %v522_v0 }
  0x29   :  { %394 = vmatpush3.bf16.msra.mxu1 %v439_v8 }
  0x2a   :  { %395 = vmatprep.subr.bf16.mxu1 %v522_v0  ;;  %410 = vmatpush3.bf16.msra.mxu0 %v445_v14 }
  0x2b   :  { %411 = vmatprep.subr.bf16.mxu0 %v522_v0 }
  0x2d   :  { %396 = vmatpush3.bf16.msra.mxu1 %v440_v9 }
  0x2e   :  { %397 = vmatprep.subr.bf16.mxu1 %v522_v0  ;;  %412 = vmatpush3.bf16.msra.mxu0 %v446_v15 }
  0x2f   :  { %413 = vmatprep.subr.bf16.mxu0 %v522_v0 }
  0x31   :  { %398 = vmatpush3.bf16.msra.mxu1 %v441_v10 }
  0x32   :  { %399 = vmatprep.subr.bf16.mxu1 %v522_v0  ;;  %414 = vmatpush3.bf16.msra.mxu0 %v447_v16 }
  0x33   :  { %415 = vmatprep.subr.bf16.mxu0 %v522_v0 }
  0x35   :  { %400 = vmatpush3.bf16.msra.mxu1 %v442_v11 }
  0x36   :  { %401 = vmatprep.subr.bf16.mxu1 %v522_v0  ;;  %416 = vmatpush3.bf16.msra.mxu0 %v448_v17 }
  0x37   :  { %417 = vmatprep.subr.bf16.mxu0 %v522_v0 }
  0x39   :  { %402 = vmatpush3.bf16.msra.mxu1 %v443_v12 }
  0x3a   :  { %418 = vmatpush3.bf16.msra.mxu0 %v449_v18 }
  0x3b   :  { %419 = vmatprep.subr.bf16.mxu0 %v522_v0 }
  0x3e   :  { %420 = vmatpush3.bf16.msra.mxu0 %v450_v19 }
  0x3f   :  { %421 = vmatprep.subr.bf16.mxu0 %v522_v0 }
  0x42   :  { %422 = vmatpush3.bf16.msra.mxu0 %v451_v33 }
  0xe4   :  { %v101_v26 = vpop.f32.mrf.mxu0 }
  0xe5   :  { %v102_v27 = vadd.f32 %v101_v26, %v50_v25 }
  0xe6   :  { %v385_v28 = vpop.f32.mrf.mxu0 }
  0xe7   :  { %v107_v29 = vmax.f32 %v102_v27, 0.0 }
  0xe8   :  { %v104_v30 = vpop.f32.mrf.mxu0 }
  0xe9   :  { %v108_v31 = vpack.c.bf16 %v107_v29, %v107_v29 }
  0xea   :  { %v386_v32 = vpop.f32.mrf.mxu0 }
  0xeb   :  { %404 = vmatmul.mubr.bf16.vlgmr.msra.gmra.mxu1 %v108_v31 }
 0x1ab   :  { %v208_v34 = vpop.f32.mrf.mxu1 }
 0x1ac   :  { %v214_v35 = vmax.f32 %v208_v34, 0.0 }
 0x1ad   :  { %v405_v36 = vpop.f32.mrf.mxu1 }
 0x1ae   :  { %v215_v37 = vpack.c.bf16 %v214_v35, %v214_v35 }
 0x1af   :  { %v211_v38 = vpop.f32.mrf.mxu1 }
 0x1b0   :  { %424 = vmatmul.mubr.bf16.vlgmr.msra.gmra.mxu0 %v215_v37 }
 0x1b1   :  { %v406_v39 = vpop.f32.mrf.mxu1 }
 0x270   :  { %v315_v40 = vpop.f32.mrf.mxu0 }
 0x271   :  { %322 = vst.msk [vmem:[#allocation7] sm:$0x3] %vm321_vm2, %v315_v40 }
 0x272   :  { %v425_v41 = vpop.f32.mrf.mxu0 }
 0x273   :  { %503 = shalt.err (!%p500_p0)
}
 0x274   :  { %332 = dma.vmem_to_hbm [thread:$0]  %s330_s1, 32, %s554_s2, [#allocation4]   ;;  %v318_v42 = vpop.f32.mrf.mxu0 }
 0x276   :  { %v426_v43 = vpop.f32.mrf.mxu0 }
 0x277   :  { %516 = dma.done.wait [#allocation4], 32  }
 0x278   :  { %517 = vsyncadd [#allocation4], 4294967264 }
 0x279   :  { %336 = vsyncpa [#allocation3], 1 }
 0x27a   :  { %337 = vsyncpa [#allocation6], 1 }
 0x27b   :  { %338 = vsyncpa [#allocation4], 1 }

</bundles_post_ra>
